<compile_context>
chip_gen: v6e
topology: v6e:2x2x1
jax: 0.10.0
libtpu: 0.0.40
codegen_flags: <defaults>
</compile_context>

<pallas_src>
import jax
import jax.numpy as jnp
from jax.experimental import pallas as pl
from jax.experimental.pallas import tpu as pltpu

# ---------------- small, module-consistent config ----------------
BERT_SIZE  = 128          # hidden size D (stand-in for 768/1024)
CHANNELS   = 5            # num_layers + 1 (stand-in for 12+1 / 24+1)
NUM_LAYERS = CHANNELS - 1
HSIZE      = 128          # prefix-MLP bottleneck (module default 256)
HLEN       = 8            # prefix length (module default 10)
BATCH      = 2
QLEN       = 8
DLEN       = 16
VOCAB      = 512
CLS_ID     = 1
SEP_ID     = 2
PREFIX_OUT = BERT_SIZE * NUM_LAYERS * 2   # rep_l2 output width


# ---------------- fused encoder kernel ----------------
def _encoder_stack_kernel(h0_ref, mask_ref, w_ref, p_ref, cls_ref, h_ref):
    # grid = (batch_tiles, layers); layer axis is sequential ("arbitrary").
    # h_ref is a VMEM scratch carrying the bf16 hidden state across layers;
    # it is never written back to HBM.  Only CLS rows are emitted at the end.
    layer = pl.program_id(1)
    last = pl.num_programs(1) - 1

    @pl.when(layer == 0)
    def _():
        h_ref[...] = h0_ref[...]          # seed VMEM-resident carry (bf16)

    bt, sp, d = h_ref.shape
    h = (h_ref[...] * mask_ref[...]).reshape(bt * sp, d)          # bf16 VPU mul
    y = jnp.dot(h, w_ref[0], preferred_element_type=jnp.float32)  # bf16 MXU, f32 acc
    y = y + p_ref[0]                                               # prefix bias (f32)
    h_new = jnp.tanh(y)                                            # f32 EUP
    h_ref[...] = h_new.reshape(bt, sp, d).astype(h_ref.dtype)      # bf16 carry

    @pl.when(layer == last)
    def _():
        # Emit only the CLS row of each sequence: lane-dense (bt, D) output.
        cls_ref[...] = h_new.reshape(bt, sp, d)[:, 0, :].astype(cls_ref.dtype)


def fused_encoder(h0, mask3, wl, prefix_rows, *, batch_tile):
    """h0: (B, S_pad, D) bf16, mask3: (B, S_pad, 1) bf16, wl: (L, D, D) bf16,
    prefix_rows: (L, 1, D) f32.  Returns cls_rep: (B, D) f32."""
    b, s_pad, d = h0.shape
    n_layers = wl.shape[0]
    assert b % batch_tile == 0
    n_tiles = b // batch_tile

    flops = 2 * n_layers * b * s_pad * d * d
    bytes_accessed = (
        h0.size * h0.dtype.itemsize
        + mask3.size * mask3.dtype.itemsize
        # weights (and prefix rows) are re-streamed once per batch tile
        + n_tiles * wl.size * wl.dtype.itemsize
        + n_tiles * prefix_rows.size * prefix_rows.dtype.itemsize
        + b * d * 4)

    return pl.pallas_call(
        _encoder_stack_kernel,
        grid=(n_tiles, n_layers),                                    # carry axis last
        in_specs=[
            pl.BlockSpec((batch_tile, s_pad, d), lambda i, l: (i, 0, 0)),  # h0 (bf16)
            pl.BlockSpec((batch_tile, s_pad, 1), lambda i, l: (i, 0, 0)),  # mask (bf16)
            # Per-layer streamed bf16 weight.  At real scale on v5e/v6e the
            # whole stack can instead be held resident (constant index_map +
            # vmem_limit_bytes); on v7x keep streaming (64 MiB VMEM) and use
            # pipeline_mode=pl.Buffered(3) if DMA stays exposed.
            pl.BlockSpec((1, d, d), lambda i, l: (l, 0, 0)),
            pl.BlockSpec((1, 1, d), lambda i, l: (l, 0, 0)),               # prefix bias
        ],
        out_specs=pl.BlockSpec((batch_tile, d), lambda i, l: (i, 0)),      # CLS rows only
        out_shape=jax.ShapeDtypeStruct((b, d), jnp.float32),
        scratch_shapes=[pltpu.VMEM((batch_tile, s_pad, d), jnp.bfloat16)],  # layer carry
        compiler_params=pltpu.CompilerParams(
            dimension_semantics=("parallel", "arbitrary")),
        cost_estimate=pl.CostEstimate(
            flops=flops,
            transcendentals=n_layers * b * s_pad * d,
            bytes_accessed=bytes_accessed),
    )(h0, mask3, wl, prefix_rows)


# ---------------- parameter init (deterministic, mirrors __init__) ----------------
def init_params(key):
    ks = jax.random.split(key, 8)
    emb = 0.02 * jax.random.normal(ks[0], (VOCAB, BERT_SIZE), jnp.float32)
    # initialize_theta(): normal(mean(emb), std(emb), size=(hlen, BERT_SIZE))
    emb_mean = jnp.mean(emb)
    emb_std = jnp.std(emb)
    rep_theta = emb_mean + emb_std * jax.random.normal(ks[1], (HLEN, BERT_SIZE), jnp.float32)
    return dict(
        emb=emb,
        rep_theta=rep_theta,
        w1=0.05 * jax.random.normal(ks[2], (BERT_SIZE, HSIZE), jnp.float32),
        b1=jnp.zeros((HSIZE,), jnp.float32),
        w2=0.05 * jax.random.normal(ks[3], (HSIZE, PREFIX_OUT), jnp.float32),
        b2=jnp.zeros((PREFIX_OUT,), jnp.float32),
        # bf16 weight stream for the encoder (f32 accumulation in-kernel)
        Wl=(0.05 * jax.random.normal(ks[4], (NUM_LAYERS, BERT_SIZE, BERT_SIZE),
                                     jnp.float32)).astype(jnp.bfloat16),
        w_cls=0.05 * jax.random.normal(ks[5], (BERT_SIZE, 1), jnp.float32),
        b_cls=jnp.zeros((1,), jnp.float32),
    )


# ---------------- forward (PMonoBertRanker.forward) ----------------
def forward(params, query_tok, query_mask, doc_tok, doc_mask):
    # --- prefix MLP in plain XLA (tiny; a separate pallas_call costs more) ---
    hmid = jnp.maximum(params["rep_theta"] @ params["w1"] + params["b1"], 0.0)
    theta_mid = hmid @ params["w2"] + params["b2"]
    # reshape(hlen*2, -1, D).permute(1, 0, 2) -> (L, hlen*2, D)
    theta = theta_mid.reshape(HLEN * 2, NUM_LAYERS, BERT_SIZE).transpose(1, 0, 2)
    # one (L, 1, D) prefix bias row per layer, hoisted out of the layer loop
    prefix_rows = jnp.mean(theta, axis=1, keepdims=True)            # f32

    # --- encode_bert input assembly (sbcount == 1 at these sizes) ---
    b = query_tok.shape[0]
    clss = jnp.full((b, 1), CLS_ID, jnp.int32)
    seps = jnp.full((b, 1), SEP_ID, jnp.int32)
    ones = jnp.ones((b, 1), jnp.float32)
    toks = jnp.concatenate([clss, query_tok, seps, doc_tok, seps], axis=1)
    mask = jnp.concatenate([ones, query_mask, ones, doc_mask, ones], axis=1)
    toks = jnp.where(toks == -1, 0, toks)
    s = toks.shape[1]
    s_pad = ((s + 7) // 8) * 8                      # pad sequence to sublane multiple

    # embedding gather (XLA glue); activations carried in bf16
    h0 = params["emb"][toks].astype(jnp.bfloat16)                    # (B, S, D)
    h0 = jnp.pad(h0, ((0, 0), (0, s_pad - s), (0, 0)))
    mask3 = jnp.pad(mask[..., None], ((0, 0), (0, s_pad - s), (0, 0))).astype(jnp.bfloat16)

    # --- fused surrogate encoder: one Pallas call over all layers ---
    # TODO(synk): pretrained HF BertModel with prompt_hidden_states not reproduced.
    cls_rep = fused_encoder(h0, mask3, params["Wl"], prefix_rows, batch_tile=b)

    # --- cls head: tiny (B, D) @ (D, 1) mat-vec in XLA; dropout == identity ---
    return cls_rep @ params["w_cls"] + params["b_cls"]


if __name__ == "__main__":
    key = jax.random.PRNGKey(0)
    k_param, k_q, k_d = jax.random.split(key, 3)
    params = init_params(k_param)

    query_tok = jax.random.randint(k_q, (BATCH, QLEN), 3, VOCAB, dtype=jnp.int32)
    doc_tok = jax.random.randint(k_d, (BATCH, DLEN), 3, VOCAB, dtype=jnp.int32)
    query_mask = jnp.ones((BATCH, QLEN), jnp.float32)
    doc_mask = jnp.ones((BATCH, DLEN), jnp.float32)

    score = jax.jit(forward)(params, query_tok, query_mask, doc_tok, doc_mask)
    score = jax.block_until_ready(score)
    assert score.shape == (BATCH, 1)
    print("KERNEL_OK")
</pallas_src>

<mosaic_0001>
module attributes {stable_mosaic.version = 11 : i64} {
  func.func @_encoder_stack_kernel(%arg0: i32, %arg1: i32, %arg2: memref<2x32x128xbf16, #tpu.memory_space<vmem>>, %arg3: memref<2x32x1xbf16, #tpu.memory_space<vmem>>, %arg4: memref<1x128x128xbf16, #tpu.memory_space<vmem>>, %arg5: memref<1x1x128xf32, #tpu.memory_space<vmem>>, %arg6: memref<2x128xf32, #tpu.memory_space<vmem>>, %arg7: memref<2x32x128xbf16, #tpu.memory_space<vmem>>) attributes {dimension_semantics = [#tpu.dimension_semantics<parallel>, #tpu.dimension_semantics<arbitrary>], iteration_bounds = array<i64: 1, 4>, scalar_prefetch = 0 : i64, scratch_operands = 1 : i64, tpu.core_type = #tpu.core_type<tc>, window_params = [{transform_indices = @transform_0, window_bounds = array<i64: 2, 32, 128>}, {transform_indices = @transform_1, window_bounds = array<i64: 2, 32, 1>}, {transform_indices = @transform_2, window_bounds = array<i64: 1, 128, 128>}, {transform_indices = @transform_3, window_bounds = array<i64: 1, 1, 128>}, {transform_indices = @transform_4, window_bounds = array<i64: 2, 128>}]} {
    %c0_i32 = arith.constant 0 : i32
    %0 = arith.cmpi eq, %arg1, %c0_i32 : i32
    %1 = arith.extui %0 : i1 to i32
    %c0_i32_0 = arith.constant 0 : i32
    %2 = arith.cmpi ne, %1, %c0_i32_0 : i32
    scf.if %2 {
      %c0_16 = arith.constant 0 : index
      %c0_17 = arith.constant 0 : index
      %c0_18 = arith.constant 0 : index
      %22 = vector.load %arg2[%c0_16, %c0_17, %c0_18] : memref<2x32x128xbf16, #tpu.memory_space<vmem>>, vector<2x32x128xbf16>
      %c0_19 = arith.constant 0 : index
      %c0_20 = arith.constant 0 : index
      %c0_21 = arith.constant 0 : index
      %23 = vector.load %arg7[%c0_19, %c0_20, %c0_21] : memref<2x32x128xbf16, #tpu.memory_space<vmem>>, vector<2x32x128xbf16>
      tpu.vector_store %arg7[%c0_19, %c0_20, %c0_21], %22 {strides = array<i32>} : memref<2x32x128xbf16, #tpu.memory_space<vmem>>, vector<2x32x128xbf16>,
    } else {
    }
    %c0 = arith.constant 0 : index
    %c0_1 = arith.constant 0 : index
    %c0_2 = arith.constant 0 : index
    %3 = vector.load %arg7[%c0, %c0_1, %c0_2] : memref<2x32x128xbf16, #tpu.memory_space<vmem>>, vector<2x32x128xbf16>
    %c0_3 = arith.constant 0 : index
    %c0_4 = arith.constant 0 : index
    %c0_5 = arith.constant 0 : index
    %4 = vector.load %arg3[%c0_3, %c0_4, %c0_5] : memref<2x32x1xbf16, #tpu.memory_space<vmem>>, vector<2x32x1xbf16>
    %5 = vector.broadcast %4 : vector<2x32x1xbf16> to vector<2x32x128xbf16>
    %6 = arith.mulf %3, %5 : vector<2x32x128xbf16>
    %7 = vector.shape_cast %6 : vector<2x32x128xbf16> to vector<64x128xbf16>
    %c0_6 = arith.constant 0 : index
    %c0_7 = arith.constant 0 : index
    %c0_8 = arith.constant 0 : index
    %8 = vector.load %arg4[%c0_6, %c0_7, %c0_8] : memref<1x128x128xbf16, #tpu.memory_space<vmem>>, vector<1x128x128xbf16>
    %9 = vector.shape_cast %8 : vector<1x128x128xbf16> to vector<128x128xbf16>
    %cst = arith.constant dense<0.000000e+00> : vector<64x128xf32>
    %10 = tpu.matmul %7, %9, %cst {dimension_numbers = #tpu.dot_dimension_numbers<[1], [0], [0], [1], [0, 0, 1, 1], [], []>} : vector<64x128xbf16>, vector<128x128xbf16>, vector<64x128xf32> -> vector<64x128xf32>
    %c0_9 = arith.constant 0 : index
    %c0_10 = arith.constant 0 : index
    %c0_11 = arith.constant 0 : index
    %11 = vector.load %arg5[%c0_9, %c0_10, %c0_11] : memref<1x1x128xf32, #tpu.memory_space<vmem>>, vector<1x1x128xf32>
    %12 = vector.shape_cast %11 : vector<1x1x128xf32> to vector<1x128xf32>
    %13 = vector.broadcast %12 : vector<1x128xf32> to vector<64x128xf32>
    %14 = arith.addf %10, %13 : vector<64x128xf32>
    %15 = math.tanh %14 : vector<64x128xf32>
    %16 = vector.shape_cast %15 : vector<64x128xf32> to vector<2x32x128xf32>
    %17 = arith.truncf %16 : vector<2x32x128xf32> to vector<2x32x128xbf16>
    %c0_12 = arith.constant 0 : index
    %c0_13 = arith.constant 0 : index
    %c0_14 = arith.constant 0 : index
    %18 = vector.load %arg7[%c0_12, %c0_13, %c0_14] : memref<2x32x128xbf16, #tpu.memory_space<vmem>>, vector<2x32x128xbf16>
    tpu.vector_store %arg7[%c0_12, %c0_13, %c0_14], %17 {strides = array<i32>} : memref<2x32x128xbf16, #tpu.memory_space<vmem>>, vector<2x32x128xbf16>,
    %c3_i32 = arith.constant 3 : i32
    %19 = arith.cmpi eq, %arg1, %c3_i32 : i32
    %20 = arith.extui %19 : i1 to i32
    %c0_i32_15 = arith.constant 0 : i32
    %21 = arith.cmpi ne, %20, %c0_i32_15 : i32
    scf.if %21 {
      %22 = vector.shape_cast %15 : vector<64x128xf32> to vector<2x32x128xf32>
      %23 = vector.extract_strided_slice %22 {offsets = [0, 0, 0], sizes = [2, 1, 128], strides = [1, 1, 1]} : vector<2x32x128xf32> to vector<2x1x128xf32>
      %24 = vector.shape_cast %23 : vector<2x1x128xf32> to vector<2x128xf32>
      %c0_16 = arith.constant 0 : index
      %c0_17 = arith.constant 0 : index
      %25 = vector.load %arg6[%c0_16, %c0_17] : memref<2x128xf32, #tpu.memory_space<vmem>>, vector<2x128xf32>
      tpu.vector_store %arg6[%c0_16, %c0_17], %24 {strides = array<i32>} : memref<2x128xf32, #tpu.memory_space<vmem>>, vector<2x128xf32>,
    } else {
    }
    return
  }
  func.func @transform_0(%arg0: i32, %arg1: i32) -> (i32, i32, i32) {
    %c0_i32 = arith.constant 0 : i32
    %c0_i32_0 = arith.constant 0 : i32
    %c0_i32_1 = arith.constant 0 : i32
    return %arg0, %c0_i32, %c0_i32_0 : i32, i32, i32
  }
  func.func @transform_1(%arg0: i32, %arg1: i32) -> (i32, i32, i32) {
    %c0_i32 = arith.constant 0 : i32
    %c0_i32_0 = arith.constant 0 : i32
    %c0_i32_1 = arith.constant 0 : i32
    return %arg0, %c0_i32, %c0_i32_0 : i32, i32, i32
  }
  func.func @transform_2(%arg0: i32, %arg1: i32) -> (i32, i32, i32) {
    %c0_i32 = arith.constant 0 : i32
    %c0_i32_0 = arith.constant 0 : i32
    %c0_i32_1 = arith.constant 0 : i32
    return %arg1, %c0_i32, %c0_i32_0 : i32, i32, i32
  }
  func.func @transform_3(%arg0: i32, %arg1: i32) -> (i32, i32, i32) {
    %c0_i32 = arith.constant 0 : i32
    %c0_i32_0 = arith.constant 0 : i32
    %c0_i32_1 = arith.constant 0 : i32
    return %arg1, %c0_i32, %c0_i32_0 : i32, i32, i32
  }
  func.func @transform_4(%arg0: i32, %arg1: i32) -> (i32, i32) {
    %c0_i32 = arith.constant 0 : i32
    %c0_i32_0 = arith.constant 0 : i32
    return %arg0, %c0_i32 : i32, i32
  }
}

</mosaic_0001>

<bundles_post_ra>
// kernel: forward.1
= control target key start
LH: loop header
LB: loop body
LE: loop exit
PB: predicated region body
PF: predicated region fallthrough
CT: control target
= control target key end

     0   :  { %s951_s15 = smov 0   ;;  %s953_s16 = smov 0   ;;  %s1048_s0 = inlined_call_operand.vmem [shape: bf16[2,32,128], index: 0, kind: input, shape index: {}]   ;;  %s1049_s1 = inlined_call_operand.vmem [shape: bf16[2,32,1], index: 1, kind: input, shape index: {}]   ;;  %s1050_s2 = inlined_call_operand.vmem [shape: bf16[4,128,128], index: 2, kind: input, shape index: {}]   ;;  %s1051_s3 = inlined_call_operand.vmem [shape: f32[4,1,128], index: 3, kind: input, shape index: {}]   ;;  %s1052_s4 = inlined_call_operand.vmem [shape: f32[2,128], index: 4, kind: output, shape index: {}]  }
   0x1   :  { %s955_s17 = smov 0  }
   0x2 LB: > { %s23_s18 = sadd.s32 1, %s918_s16  ;;  %p735_p0 = scmp.ge.s32.totalorder %s922_s17, 1  ;;  %s922_s17 = sphi %s955_s17, %s14_s17   ;;  %s918_s16 = sphi %s953_s16, %s1054_s16   ;;  %s914_s15 = sphi %s951_s15, %s1053_s15  }
   0x3   : > { %p24_p1 = scmp.ge.s32.totalorder %s23_s18, 4  ;;  %p206_p2 = scmp.lt.s32.totalorder %s922_s17, 5 }
   0x5   : > { %s1056_s18 = smov (%p24_p1, %s23_s18), 0  ;;  %p207_p3 = pnand %p735_p0, %p206_p2 }
   0x6   : > { %p260_p4 = scmp.lt.s32.totalorder (!%p207_p3), %s914_s15, 3  ;;  %p738_p5 = scmp.ne.s32.totalorder (!%p207_p3), %s914_s15, 0 }
   0x7   : > { %210 = sbr.rel (%p207_p3) target bundleno = 387 (0x183), region = 36 }
   0xc   : > { %s973_s19 = scalar_select %p260_p4, %s914_s15, 3 }
   0xd   : > { %276 = sbr.rel (%p738_p5) target bundleno = 21 (0x15), region = 40 }
   0xe   : > { %s764_s20 = sshll.u32 %s973_s19, 6  ;;  %s267_s23 = scalar_lea.vmem %s1051_s3, %s973_s19 }
   0xf   : > { %s983_s26 = scalar_lea.vmem %s1050_s2, %s764_s20 }
  0x12   : > { %v277_v0 = vld [vmem:[%s1048_s0] sm:$0xff]   ;;  %v279_v1 = vld [vmem:[%s1048_s0 + $0x8] sm:$0xff]   ;;  %v281_v2 = vld [vmem:[%s1048_s0 + $0x10] sm:$0xff]  }
  0x13   : > { %285 = vst [vmem:[#allocation2] sm:$0xff] %v277_v0   ;;  %287 = vst [vmem:[#allocation2 + $0x8] sm:$0xff] %v279_v1   ;;  %v283_v3 = vld [vmem:[%s1048_s0 + $0x18] sm:$0xff]  }
  0x14   : > { %289 = vst [vmem:[#allocation2 + $0x10] sm:$0xff] %v281_v2   ;;  %291 = vst [vmem:[#allocation2 + $0x18] sm:$0xff] %v283_v3  }
  0x15 PF: > { %v305_v4 = vld [vmem:[%s1049_s1 + $0x10] sm:$0xf]  ;;  %v301_v5 = vld [vmem:[%s1049_s1] sm:$0xf]  ;;  %v876_v6 = vld [vmem:[%s983_s26 + $0x38] sm:$0xff]   ;;  %v924_v7 = vmov 0   ;;  %v317_v23 = vlaneseq }
  0x16   : > { %875 = vset.pattern.permute.xlu1 %v924_v7  ;;  %874 = vset.pattern.permute.xlu0 %v924_v7  ;;  %v306_v8 = vld [vmem:[%s1049_s1 + $0x14] sm:$0xf]  ;;  %v302_v9 = vld [vmem:[%s1049_s1 + $0x4] sm:$0xf]  ;;  %v878_v11 = vld [vmem:[%s983_s26 + $0x28] sm:$0xff]   ;;  %p760_p6 = scmp.ne.s32.totalorder %s914_s15, 3 }
  0x17   : > { %359 = vperm.xlu1 %875, %v305_v4   ;;  %311 = vperm.xlu0 %874, %v301_v5   ;;  %v877_v10 = vld [vmem:[%s983_s26 + $0x30] sm:$0xff]   ;;  %v304_v12 = vld [vmem:[%s1049_s1 + $0xc] sm:$0xf]  ;;  %v303_v13 = vld [vmem:[%s1049_s1 + $0x8] sm:$0xf]  ;;  %v318_v25 = vshrl.u32 %v317_v23, 7 }
  0x18   : > { %808 = vmatprep.subr.bf16.mxu0 %v876_v6  ;;  %832 = vmatprep.subr.bf16.mxu1 %v876_v6  ;;  %v879_v14 = vld [vmem:[%s983_s26 + $0x20] sm:$0xff]   ;;  %v308_v15 = vld [vmem:[%s1049_s1 + $0x1c] sm:$0xf]  ;;  %v307_v16 = vld [vmem:[%s1049_s1 + $0x18] sm:$0xf] }
  0x19   : > { %809 = vmatpush3.bf16.msra.mxu0 %v876_v6  ;;  %840 = vmatpush3.bf16.msra.mxu1 %v876_v6  ;;  %v880_v17 = vld [vmem:[%s983_s26 + $0x18] sm:$0xff]   ;;  %v881_v18 = vld [vmem:[%s983_s26 + $0x10] sm:$0xff]   ;;  %v882_v19 = vld [vmem:[%s983_s26 + $0x8] sm:$0xff]   ;;  %v925_v21 = vmov 839922192  }
  0x1a   : > { %810 = vmatprep.subr.bf16.mxu0 %v877_v10  ;;  %833 = vmatprep.subr.bf16.mxu1 %v877_v10  ;;  %v883_v20 = vld [vmem:[%s983_s26] sm:$0xff]   ;;  %v315_v22 = vunpack.c.l.s4 %v925_v21  ;;  %v296_v44 = vld [vmem:[#allocation2 + $0xc] sm:$0xf]  ;;  %v295_v46 = vld [vmem:[#allocation2 + $0x8] sm:$0xf] }
  0x1b   : > { %371 = vperm.xlu1 %875, %v306_v8   ;;  %323 = vperm.xlu0 %874, %v302_v9   ;;  %v293_v31 = vld [vmem:[#allocation2] sm:$0xf]  ;;  %v294_v34 = vld [vmem:[#allocation2 + $0x4] sm:$0xf]  ;;  %v297_v35 = vld [vmem:[#allocation2 + $0x10] sm:$0xf] }
  0x1c   : > { %v316_v24 = vunpack.c.0.s8 %v315_v22  ;;  %v298_v36 = vld [vmem:[#allocation2 + $0x14] sm:$0xf]  ;;  %v300_v54 = vld [vmem:[#allocation2 + $0x1c] sm:$0xf]  ;;  %v299_v56 = vld [vmem:[#allocation2 + $0x18] sm:$0xf] }
  0x1d   : > { %811 = vmatpush3.bf16.msra.mxu0 %v877_v10  ;;  %841 = vmatpush3.bf16.msra.mxu1 %v877_v10  ;;  %v739_v63 = vld [vmem:[%s267_s23] ss:$0 sm:$0xff] }
  0x1e   : > { %812 = vmatprep.subr.bf16.mxu0 %v878_v11  ;;  %834 = vmatprep.subr.bf16.mxu1 %v878_v11  ;;  %v319_v26 = vsub.s32 %v316_v24, %v318_v25 }
  0x1f   : > { %347 = vperm.xlu1 %875, %v304_v12   ;;  %335 = vperm.xlu0 %874, %v303_v13  }
  0x21   : > { %813 = vmatpush3.bf16.msra.mxu0 %v878_v11  ;;  %842 = vmatpush3.bf16.msra.mxu1 %v878_v11 }
  0x22   : > { %814 = vmatprep.subr.bf16.mxu0 %v879_v14  ;;  %835 = vmatprep.subr.bf16.mxu1 %v879_v14 }
  0x23   : > { %395 = vperm.xlu1 %875, %v308_v15   ;;  %383 = vperm.xlu0 %874, %v307_v16  }
  0x25   : > { %815 = vmatpush3.bf16.msra.mxu0 %v879_v14  ;;  %843 = vmatpush3.bf16.msra.mxu1 %v879_v14 }
  0x26   : > { %816 = vmatprep.subr.bf16.mxu0 %v880_v17  ;;  %836 = vmatprep.subr.bf16.mxu1 %v880_v17 }
  0x29   : > { %817 = vmatpush3.bf16.msra.mxu0 %v880_v17  ;;  %844 = vmatpush3.bf16.msra.mxu1 %v880_v17 }
  0x2a   : > { %818 = vmatprep.subr.bf16.mxu0 %v881_v18  ;;  %837 = vmatprep.subr.bf16.mxu1 %v881_v18 }
  0x2d   : > { %819 = vmatpush3.bf16.msra.mxu0 %v881_v18  ;;  %845 = vmatpush3.bf16.msra.mxu1 %v881_v18 }
  0x2e   : > { %820 = vmatprep.subr.bf16.mxu0 %v882_v19  ;;  %838 = vmatprep.subr.bf16.mxu1 %v882_v19 }
  0x31   : > { %821 = vmatpush3.bf16.msra.mxu0 %v882_v19  ;;  %846 = vmatpush3.bf16.msra.mxu1 %v882_v19 }
  0x32   : > { %822 = vmatprep.subr.bf16.mxu0 %v883_v20  ;;  %839 = vmatprep.subr.bf16.mxu1 %v883_v20 }
  0x35   : > { %823 = vmatpush3.bf16.msra.mxu0 %v883_v20  ;;  %847 = vmatpush3.bf16.msra.mxu1 %v883_v20 }
  0x92   : > { %v360_v27 = vpop.permute.xlu1 %359  ;;  %v312_v28 = vpop.permute.xlu0 %311 }
  0x93   : > { %v368_v29 = vrot.slane %v360_v27, %v319_v26  ;;  %v320_v30 = vrot.slane %v312_v28, %v319_v26 }
  0x95   : > { %v405_v39 = vmul.bf16 %v320_v30, %v293_v31  ;;  %v409_v41 = vmul.bf16 %v368_v29, %v297_v35 }
  0x96   : > { %v372_v32 = vpop.permute.xlu1 %371  ;;  %v324_v33 = vpop.permute.xlu0 %323 }
  0x97   : > { %v380_v37 = vrot.slane %v372_v32, %v319_v26  ;;  %v332_v38 = vrot.slane %v324_v33, %v319_v26 }
  0x99   : > { %v406_v40 = vmul.bf16 %v332_v38, %v294_v34  ;;  %v410_v42 = vmul.bf16 %v380_v37, %v298_v36 }
  0x9a   : > { %v348_v43 = vpop.permute.xlu1 %347  ;;  %v336_v45 = vpop.permute.xlu0 %335 }
  0x9b   : > { %v356_v47 = vrot.slane %v348_v43, %v319_v26  ;;  %v344_v48 = vrot.slane %v336_v45, %v319_v26  ;;  %v740_v49 = vcombine.low %v405_v39, %v406_v40  ;;  %v742_v50 = vcombine.low %v409_v41, %v410_v42 }
  0x9d   : > { %v408_v51 = vmul.bf16 %v356_v47, %v296_v44  ;;  %v407_v52 = vmul.bf16 %v344_v48, %v295_v46  ;;  %824 = vmatprep.mubr.bf16.mxu0 %v740_v49  ;;  %828 = vmatprep.mubr.bf16.mxu1 %v742_v50 }
  0x9e   : > { %v396_v53 = vpop.permute.xlu1 %395  ;;  %v384_v55 = vpop.permute.xlu0 %383 }
  0x9f   : > { %v404_v57 = vrot.slane %v396_v53, %v319_v26  ;;  %v392_v58 = vrot.slane %v384_v55, %v319_v26  ;;  %v741_v59 = vcombine.low %v407_v52, %v408_v51 }
  0xa1   : > { %v412_v60 = vmul.bf16 %v404_v57, %v300_v54  ;;  %v411_v61 = vmul.bf16 %v392_v58, %v299_v56  ;;  %825 = vmatmul.mubr.bf16.vlgmr.msra.gmra.mxu0 %v741_v59 }
  0xa3   : > { %v743_v62 = vcombine.low %v411_v61, %v412_v60 }
  0xa5   : > { %829 = vmatmul.mubr.bf16.vlgmr.msra.gmra.mxu1 %v743_v62 }
 0x161   : > { %v826_v0 = vpop.f32.mrf.mxu0 }
 0x162   : > { %v551_v1 = vadd.f32 %v826_v0, %v739_v63 }
 0x163   : > { %v542_v2 = vpop.f32.mrf.mxu0 }
 0x164   : > { %v543_v3 = vadd.f32 %v739_v63, %v542_v2  ;;  %884 = vtanh.f32 %v551_v1 }
 0x165   : > { %v827_v4 = vpop.f32.mrf.mxu0  ;;  %v830_v5 = vpop.f32.mrf.mxu1 }
 0x166   : > { %v554_v6 = vadd.f32 %v827_v4, %v739_v63  ;;  %v567_v7 = vadd.f32 %v830_v5, %v739_v63 }
 0x167   : > { %v545_v8 = vpop.f32.mrf.mxu0  ;;  %v558_v9 = vpop.f32.mrf.mxu1 }
 0x168   : > { %886 = vtanh.f32 %v554_v6  ;;  %v546_v10 = vadd.f32 %v739_v63, %v545_v8  ;;  %v559_v11 = vadd.f32 %v739_v63, %v558_v9 }
 0x169   : > { %888 = vtanh.f32 %v543_v3  ;;  %v831_v12 = vpop.f32.mrf.mxu1 }
 0x16a   : > { %890 = vtanh.f32 %v546_v10  ;;  %v570_v13 = vadd.f32 %v831_v12, %v739_v63 }
 0x16b   : > { %892 = vtanh.f32 %v567_v7  ;;  %v561_v14 = vpop.f32.mrf.mxu1 }
 0x16c   : > { %894 = vtanh.f32 %v570_v13  ;;  %v562_v15 = vadd.f32 %v739_v63, %v561_v14 }
 0x16d   : > { %896 = vtanh.f32 %v559_v11 }
 0x16e   : > { %898 = vtanh.f32 %v562_v15 }
 0x171   : > { %v885_v16 = vpop.eup %884 }
 0x175   : > { %v887_v17 = vpop.eup %886 }
 0x176   : > { %v889_v18 = vpop.eup %888  ;;  %v781_v19 = vpack.c.bf16 %v887_v17, %v885_v16 }
 0x177   : > { %v891_v20 = vpop.eup %890 }
 0x178   : > { %v893_v21 = vpop.eup %892  ;;  %793 = vst [vmem:[#allocation2 + $0x8] sm:$0xff] %v781_v19   ;;  %v776_v22 = vpack.c.bf16 %v891_v20, %v889_v18 }
 0x179   : > { %v895_v23 = vpop.eup %894 }
 0x17a   : > { %v897_v24 = vpop.eup %896  ;;  %777 = vst [vmem:[#allocation2] sm:$0xff] %v776_v22   ;;  %v791_v25 = vpack.c.bf16 %v895_v23, %v893_v21  ;;  %624 = sbr.rel (%p760_p6) target bundleno = 387 (0x183), region = 44 }
 0x17b   : > { %v899_v26 = vpop.eup %898 }
 0x17c   : > { %795 = vst [vmem:[#allocation2 + $0x18] sm:$0xff] %v791_v25   ;;  %v786_v27 = vpack.c.bf16 %v899_v26, %v897_v24 }
 0x17e   : > { %794 = vst [vmem:[#allocation2 + $0x10] sm:$0xff] %v786_v27  }
 0x17f   : > { %v627_v28 = vrot.slane %v897_v24, 7  ;;  %vm628_vm0 = vcmask 1041409  }
 0x181   : > { %v629_v29 = vsel %vm628_vm0, %v627_v28, %v889_v18 }
 0x182   : > { %631 = vst [vmem:[%s1052_s4] sm:$0x3] %v629_v29 }
 0x183 PF: > { %s14_s17 = sadd.s32 1, %s922_s17   ;;  %s1053_s15 = smov %s918_s16 }
 0x184   : > { %p11_p7 = scmp.ge.s32.totalorder %s14_s17, 6   ;;  %s1054_s16 = smov %s1056_s18 }
 0x186   :  { %13 = sbr.rel (!%p11_p7) target bundleno = 2 (0x2), region = 83 }

</bundles_post_ra>
